<compile_context>
chip_gen: v7x
topology: tpu7x:2x2x1
jax: 0.10.0
libtpu: 0.0.40
codegen_flags: <defaults>
</compile_context>

<pallas_src>
import functools

import jax
import jax.numpy as jnp
from jax.experimental import pallas as pl
from jax.experimental.pallas import tpu as pltpu

_MAX_DMAS = 8                 # max in-flight DMAs (spread across DMA engines)
_MIN_BYTES_PER_DMA = 4 << 20  # keep each DMA >= ~4 MiB when the tensor allows


def _row_chunks(rows, row_bytes):
    """Partition `rows` into <= _MAX_DMAS contiguous (start, size) chunks,
    each carrying >= _MIN_BYTES_PER_DMA when the tensor is large enough."""
    total_bytes = rows * row_bytes
    n = int(max(1, min(_MAX_DMAS, rows, total_bytes // _MIN_BYTES_PER_DMA)))
    base, rem = divmod(rows, n)
    chunks, start = [], 0
    for i in range(n):
        size = base + (1 if i < rem else 0)
        chunks.append((start, size))
        start += size
    return tuple(chunks)


def _hbm_copy_kernel(x_hbm, o_hbm, sems, *, chunks):
    # Identity copy: a few large direct src->dst DMAs, all in flight at once,
    # then wait for all of them.  No VMEM staging, no vector load/store slots.
    copies = []
    for i, (start, size) in enumerate(chunks):   # static Python unroll
        cp = pltpu.make_async_copy(
            x_hbm.at[pl.ds(start, size)],
            o_hbm.at[pl.ds(start, size)],
            sems.at[i],
        )
        cp.start()
        copies.append(cp)
    for cp in copies:
        cp.wait()


def _dma_identity_copy(x2d):
    """Identity copy of a 2-D array via direct HBM->HBM async DMA."""
    rows, cols = x2d.shape
    itemsize = jnp.dtype(x2d.dtype).itemsize
    chunks = _row_chunks(rows, cols * itemsize)
    return pl.pallas_call(
        functools.partial(_hbm_copy_kernel, chunks=chunks),
        out_shape=jax.ShapeDtypeStruct((rows, cols), x2d.dtype),
        in_specs=[pl.BlockSpec(memory_space=pl.ANY)],
        out_specs=pl.BlockSpec(memory_space=pl.ANY),
        scratch_shapes=[pltpu.SemaphoreType.DMA((len(chunks),))],
        cost_estimate=pl.CostEstimate(
            flops=0,
            transcendentals=0,
            bytes_accessed=2 * rows * cols * itemsize,
        ),
    )(x2d)


@functools.partial(jax.jit, static_argnums=(1, 2, 3))
def unflatten_forward(x, C, H, W):
    """Reproduces Unflatten.forward: (N, C*H*W) -> (N, C, H, W)."""
    N, flat = x.shape
    CHW = C * H * W
    assert flat == CHW, f"expected last dim {CHW}, got {flat}"

    # Pallas identity copy (pure HBM->HBM DMA), then a metadata-only
    # row-major view to (N, C, H, W) — identical to torch .view().
    copied = _dma_identity_copy(x)
    return copied.reshape(N, C, H, W)


class Unflatten:
    """JAX/Pallas port of the PyTorch Unflatten module (no parameters)."""

    def __init__(self, N=-1, C=128, H=7, W=7):
        self.N = N
        self.C = C
        self.H = H
        self.W = W

    def __call__(self, x):
        return unflatten_forward(x, self.C, self.H, self.W)


if __name__ == "__main__":
    # Small shapes consistent with the module: N=2, C=4, H=16, W=16.
    N, C, H, W = 2, 4, 16, 16
    key = jax.random.PRNGKey(0)
    x = jax.random.normal(key, (N, C * H * W), dtype=jnp.float32)

    module = Unflatten(N=-1, C=C, H=H, W=W)
    out = jax.block_until_ready(module(x))

    # Verify shape and exact reshape semantics against plain JAX.
    expected = x.reshape(N, C, H, W)
    assert out.shape == (N, C, H, W), out.shape
    assert out.dtype == x.dtype
    assert bool(jnp.all(out == expected))

    print("KERNEL_OK")
</pallas_src>

<mosaic_0001>
module attributes {stable_mosaic.version = 11 : i64} {
  func.func @_hbm_copy_kernel(%arg0: memref<2x1024xf32, #tpu.memory_space<any>>, %arg1: memref<2x1024xf32, #tpu.memory_space<any>>, %arg2: memref<1x!tpu.dma_semaphore, #tpu.memory_space<semaphore_mem>>) attributes {dimension_semantics = [], scalar_prefetch = 0 : i64, scratch_operands = 1 : i64, tpu.core_type = #tpu.core_type<tc>} {
    %c0_i32 = arith.constant 0 : i32
    %c0_i32_0 = arith.constant 0 : i32
    %c0_i32_1 = arith.constant 0 : i32
    %0 = tpu.memref_slice %arg0[%c0_i32_0, %c0_i32_1] : memref<2x1024xf32, #tpu.memory_space<any>> -> memref<2x1024xf32, #tpu.memory_space<any>>
    %c0_i32_2 = arith.constant 0 : i32
    %c0_i32_3 = arith.constant 0 : i32
    %1 = tpu.memref_slice %arg1[%c0_i32_2, %c0_i32_3] : memref<2x1024xf32, #tpu.memory_space<any>> -> memref<2x1024xf32, #tpu.memory_space<any>>
    %2 = tpu.memref_slice %arg2[%c0_i32] : memref<1x!tpu.dma_semaphore, #tpu.memory_space<semaphore_mem>> -> memref<1x!tpu.dma_semaphore, #tpu.memory_space<semaphore_mem>>
    %3 = tpu.memref_squeeze %2 : memref<1x!tpu.dma_semaphore, #tpu.memory_space<semaphore_mem>> -> memref<!tpu.dma_semaphore, #tpu.memory_space<semaphore_mem>>
    tpu.enqueue_dma source(%0 : memref<2x1024xf32, #tpu.memory_space<any>>) target(%1 : memref<2x1024xf32, #tpu.memory_space<any>>) target_semaphore(%3 : memref<!tpu.dma_semaphore, #tpu.memory_space<semaphore_mem>>)
    %c0_i32_4 = arith.constant 0 : i32
    %c0_i32_5 = arith.constant 0 : i32
    %c0_i32_6 = arith.constant 0 : i32
    %4 = tpu.memref_slice %arg0[%c0_i32_5, %c0_i32_6] : memref<2x1024xf32, #tpu.memory_space<any>> -> memref<2x1024xf32, #tpu.memory_space<any>>
    %c0_i32_7 = arith.constant 0 : i32
    %c0_i32_8 = arith.constant 0 : i32
    %5 = tpu.memref_slice %arg1[%c0_i32_7, %c0_i32_8] : memref<2x1024xf32, #tpu.memory_space<any>> -> memref<2x1024xf32, #tpu.memory_space<any>>
    %6 = tpu.memref_slice %arg2[%c0_i32_4] : memref<1x!tpu.dma_semaphore, #tpu.memory_space<semaphore_mem>> -> memref<1x!tpu.dma_semaphore, #tpu.memory_space<semaphore_mem>>
    %7 = tpu.memref_squeeze %6 : memref<1x!tpu.dma_semaphore, #tpu.memory_space<semaphore_mem>> -> memref<!tpu.dma_semaphore, #tpu.memory_space<semaphore_mem>>
    tpu.wait_dma2 semaphore(%7 : memref<!tpu.dma_semaphore, #tpu.memory_space<semaphore_mem>>) src(%4 : memref<2x1024xf32, #tpu.memory_space<any>>) dst(%5 : memref<2x1024xf32, #tpu.memory_space<any>>)
    return
  }
}

</mosaic_0001>

<bundles_post_ra>
// kernel: unflatten_forward.1
= control target key start
LH: loop header
LB: loop body
LE: loop exit
PB: predicated region body
PF: predicated region fallthrough
CT: control target
= control target key end

     0   :  { %s77_s0 = inlined_call_operand.hbm [shape: f32[2,1024], index: 0, kind: input, shape index: {}]   ;;  %s78_s1 = inlined_call_operand.vmem [shape: f32[2,1024], index: 1, kind: output, shape index: {}]  }
   0x1   :  { %s13_s8 = sshll.u32 %s78_s1, 4  ;;  %s28_s11 = scalar_lea.hbm %s77_s0, 256  ;;  %s14_s8 = int_to_ptr.vmem [resolvable:$true] %s13_s8 }
   0x2   :  { %p29_p0 = scmp.ne.s32.totalorder %s77_s0, %s28_s11  ;;  %p32_p1 = scmp.lt.u32.totalorder %s28_s11, %s77_s0 }
   0x4   :  { %p34_p2 = pnand %p32_p1, %p29_p0 }
   0x6   :  { %37 = shalt.err (!%p34_p2)  }
   0x7   :  { %s38_s16 = scalar_lea.vmem %s14_s8, 256  ;;  %p43_p4 = scmp.lt.s32.totalorder %s14_s8, %s14_s8 }
   0x8   :  { %p39_p3 = scmp.ne.s32.totalorder %s14_s8, %s38_s16  ;;  %p44_p5 = scmp.lt.s32.totalorder %s38_s16, %s38_s16 }
   0xa   :  { %p45_p6 = por %p44_p5, %p43_p4 }
   0xc   :  { %p46_p7 = pnand %p45_p6, %p39_p3 }
   0xe   :  { %49 = shalt.err (!%p46_p7)  }
   0xf   :  { %16 = dma.hbm_to_vmem [thread:$0]  %s77_s0, 256, %s14_s8, [#allocation2] }
  0x10   :  { %50 = dma.done.wait [#allocation2], 256 }
  0x11   :  { %51 = vsyncadd [#allocation2], 4294967040 }
  0x12   :  { %21 = vsyncmov [#allocation2] }
  0x15   :  { %s22_s18 = vpop.sfrf %21 }
  0x16   :  { %p27_p8 = scmp.ne.s32.totalorder %s22_s18, 0 }
  0x18   :  { %26 = shalt.err (%p27_p8)  }

</bundles_post_ra>
